<compile_context>
chip_gen: v7x
topology: tpu7x:2x2x1
jax: 0.10.0
libtpu: 0.0.40
codegen_flags: <defaults>
</compile_context>

<pallas_src>
import math

import jax
import jax.numpy as jnp
from jax import lax
from jax.experimental import pallas as pl
from jax.experimental.pallas import tpu as pltpu


def _cdiv(a: int, b: int) -> int:
    return (a + b - 1) // b


def _round_up(a: int, b: int) -> int:
    return _cdiv(a, b) * b


_VMEM_TARGET = 24 * 1024 * 1024  # keep the per-call tile footprint under this


# ---------------------------------------------------------------------------
# Kernels
# ---------------------------------------------------------------------------

def _contract_k(a, b):
    """a: (m, k), b: (n, k) -> (m, n); MXU matmul with f32 accumulation."""
    return lax.dot_general(
        a, b, (((1,), (1,)), ((), ())), preferred_element_type=jnp.float32
    )


def _resident_kernel_t(x_ref, w_ref, b_ref, o_ref):
    """Resident weight, transposed output: o (N, tm) is lane-dense along M."""
    s = _contract_k(w_ref[...], x_ref[...])                     # (N, tm)
    o_ref[...] = (s + b_ref[...].astype(jnp.float32)).astype(o_ref.dtype)


def _resident_kernel(x_ref, w_ref, b_ref, o_ref):
    """Resident weight, normal orientation: o (tm, N)."""
    s = _contract_k(x_ref[...], w_ref[...])                     # (tm, N)
    o_ref[...] = (s + b_ref[...].astype(jnp.float32)).astype(o_ref.dtype)


def _tiled_kernel_direct(x_ref, w_ref, b_ref, o_ref):
    """Tiled fallback, single K block: direct write, no scratch, no pl.when."""
    s = _contract_k(x_ref[...], w_ref[...])
    o_ref[...] = (s + b_ref[...].astype(jnp.float32)).astype(o_ref.dtype)


def _tiled_kernel_accum_out(x_ref, w_ref, b_ref, o_ref):
    """Tiled fallback, multi K block, f32 output: accumulate into the resident
    output block (no separate scratch buffer / extra VMEM round trip)."""
    @pl.when(pl.program_id(2) == 0)
    def _init():
        o_ref[...] = jnp.broadcast_to(b_ref[...].astype(o_ref.dtype), o_ref.shape)

    o_ref[...] += _contract_k(x_ref[...], w_ref[...])


def _tiled_kernel_acc(x_ref, w_ref, b_ref, o_ref, acc_ref):
    """Tiled fallback, multi K block, non-f32 output: f32 scratch accumulator."""
    @pl.when(pl.program_id(2) == 0)
    def _init():
        acc_ref[...] = jnp.zeros_like(acc_ref)

    acc_ref[...] += _contract_k(x_ref[...], w_ref[...])

    @pl.when(pl.program_id(2) == pl.num_programs(2) - 1)
    def _finalize():
        o_ref[...] = (acc_ref[...] + b_ref[...].astype(jnp.float32)).astype(o_ref.dtype)


# ---------------------------------------------------------------------------
# Tile selection helpers
# ---------------------------------------------------------------------------

def _choose_tm(m_al: int, gran: int, cap: int, bytes_per_row: int,
               fixed_bytes: int) -> int:
    """Largest row tile (multiple of gran, <= cap) fitting the VMEM budget,
    split so that M padding waste stays small."""
    budget = max(_VMEM_TARGET - fixed_bytes, gran * max(bytes_per_row, 1))
    tm_vmem = max(gran, (budget // max(bytes_per_row, 1)) // gran * gran)
    cap = max(gran, min(cap, tm_vmem))
    nblk = _cdiv(m_al, cap)
    return min(cap, _round_up(_cdiv(m_al, nblk), gran))


def _vmem_limit(footprint: int) -> int:
    # Derived from the real footprint, floored at the universal 32 MiB scoped
    # default and capped at v7x's 64 MiB physical VMEM.
    return int(min(64 << 20, max(32 << 20, 2 * footprint)))


# ---------------------------------------------------------------------------
# Forward
# ---------------------------------------------------------------------------

def dense_only_forward(x, weight, bias, *, force_tiled: bool = False):
    """y = x @ weight.T + bias, squeeze(-1) iff d_out == 1.

    x:      (..., d_model)
    weight: (d_out, d_model)   -- torch nn.Linear layout (kept; no wrapper .T)
    bias:   (d_out,)
    """
    *lead, K = x.shape
    N = weight.shape[0]
    M = 1
    for d in lead:
        M *= d
    M = max(M, 1)

    x2 = x.reshape(M, K)
    out_dtype = x.dtype
    xi = jnp.dtype(x.dtype).itemsize
    wi = jnp.dtype(weight.dtype).itemsize
    oi = jnp.dtype(out_dtype).itemsize

    cost = pl.CostEstimate(
        flops=2 * M * K * N,
        transcendentals=0,
        bytes_accessed=xi * M * K + wi * N * K + oi * M * N + 4 * N,
    )

    w_bytes = N * K * wi
    transposed = N < 128                      # tiny d_out -> transposed output
    gran_a = 128 if transposed else 8
    per_row_a = 2 * K * xi + 2 * N * oi       # double-buffered x tile + out tile
    fixed_a = 2 * w_bytes + 2 * N * 4 + (1 << 20)
    resident_ok = (
        not force_tiled
        and w_bytes <= (6 << 20)
        and fixed_a + gran_a * per_row_a <= _VMEM_TARGET
    )

    if resident_ok:
        # ---------------- resident-weight fast path (1-D grid over rows) ----
        m_al = _round_up(M, gran_a)
        tm = _choose_tm(m_al, gran_a, 1024, per_row_a, fixed_a)
        # Guarantee >= 2 blocks on the (only) parallel axis when possible so
        # both v7x TensorCores get work.
        if _cdiv(m_al, tm) < 2 and m_al >= 2 * gran_a:
            tm = _round_up(_cdiv(m_al, 2), gran_a)
        m_pad = _round_up(m_al, tm)
        if m_pad != M:
            x2 = jnp.pad(x2, ((0, m_pad - M), (0, 0)))
        grid = (m_pad // tm,)
        vmem_limit = _vmem_limit(per_row_a * tm + fixed_a)
        params = pltpu.CompilerParams(
            dimension_semantics=("parallel",), vmem_limit_bytes=vmem_limit
        )

        if transposed:
            # Output (N, m_pad): lane-dense along rows; no padded-N writeback.
            b2 = bias.reshape(N, 1)
            out = pl.pallas_call(
                _resident_kernel_t,
                out_shape=jax.ShapeDtypeStruct((N, m_pad), out_dtype),
                grid_spec=pltpu.PrefetchScalarGridSpec(
                    num_scalar_prefetch=0,
                    grid=grid,
                    in_specs=[
                        pl.BlockSpec((tm, K), lambda i: (i, 0)),   # x rows
                        pl.BlockSpec((N, K), lambda i: (0, 0)),    # resident W
                        pl.BlockSpec((N, 1), lambda i: (0, 0)),    # resident b
                    ],
                    out_specs=pl.BlockSpec((N, tm), lambda i: (0, i)),
                ),
                compiler_params=params,
                cost_estimate=cost,
            )(x2, weight, b2)
            y = out[:, :M].T                                       # tiny (M, N)
        else:
            b2 = bias.reshape(1, N)
            out = pl.pallas_call(
                _resident_kernel,
                out_shape=jax.ShapeDtypeStruct((m_pad, N), out_dtype),
                grid_spec=pltpu.PrefetchScalarGridSpec(
                    num_scalar_prefetch=0,
                    grid=grid,
                    in_specs=[
                        pl.BlockSpec((tm, K), lambda i: (i, 0)),
                        pl.BlockSpec((N, K), lambda i: (0, 0)),
                        pl.BlockSpec((1, N), lambda i: (0, 0)),
                    ],
                    out_specs=pl.BlockSpec((tm, N), lambda i: (i, 0)),
                ),
                compiler_params=params,
                cost_estimate=cost,
            )(x2, weight, b2)
            y = out[:M, :]
    else:
        # ---------------- tiled fallback (big weight) -----------------------
        # Always pad K and N to multiples of 128 (zero pads are exact) so the
        # K axis is always tiled and VMEM use is bounded on every generation.
        K_pad = _round_up(K, 128)
        N_pad = _round_up(N, 128)
        tk = 512 if K_pad % 512 == 0 else (256 if K_pad % 256 == 0 else 128)
        tk = min(tk, K_pad)
        tn = 256 if N_pad % 256 == 0 else 128
        tn = min(tn, N_pad)
        k_grid = K_pad // tk

        use_acc_scratch = (k_grid > 1) and (out_dtype != jnp.float32)
        per_row = 2 * tk * xi + 2 * tn * oi + (4 * tn if use_acc_scratch else 0)
        fixed = 2 * tk * tn * wi + 2 * tn * 4 + (1 << 20)
        m_al = _round_up(M, 8)
        tm = _choose_tm(m_al, 8, 1024, per_row, fixed)
        if (_cdiv(m_al, tm) * (N_pad // tn)) < 2 and m_al >= 16:
            tm = _round_up(_cdiv(m_al, 2), 8)
        m_pad = _round_up(m_al, tm)

        if m_pad != M or K_pad != K:
            x2 = jnp.pad(x2, ((0, m_pad - M), (0, K_pad - K)))
        w2 = weight
        if N_pad != N or K_pad != K:
            w2 = jnp.pad(weight, ((0, N_pad - N), (0, K_pad - K)))
        b2 = bias if N_pad == N else jnp.pad(bias, (0, N_pad - N))
        b2 = b2.reshape(1, N_pad)

        if k_grid == 1:
            kernel, scratch = _tiled_kernel_direct, []
        elif out_dtype == jnp.float32:
            kernel, scratch = _tiled_kernel_accum_out, []
        else:
            kernel, scratch = _tiled_kernel_acc, [pltpu.VMEM((tm, tn), jnp.float32)]

        grid = (m_pad // tm, N_pad // tn, k_grid)
        vmem_limit = _vmem_limit(per_row * tm + fixed)

        out = pl.pallas_call(
            kernel,
            out_shape=jax.ShapeDtypeStruct((m_pad, N_pad), out_dtype),
            grid_spec=pltpu.PrefetchScalarGridSpec(
                num_scalar_prefetch=0,
                grid=grid,
                in_specs=[
                    pl.BlockSpec((tm, tk), lambda i, j, k: (i, k)),   # x tile
                    pl.BlockSpec((tn, tk), lambda i, j, k: (j, k)),   # W tile (torch layout)
                    pl.BlockSpec((1, tn), lambda i, j, k: (0, j)),    # bias
                ],
                out_specs=pl.BlockSpec((tm, tn), lambda i, j, k: (i, j)),
                scratch_shapes=scratch,
            ),
            compiler_params=pltpu.CompilerParams(
                dimension_semantics=("parallel", "parallel", "arbitrary"),
                vmem_limit_bytes=vmem_limit,
            ),
            cost_estimate=cost,
        )(x2, w2, b2)
        y = out[:M, :N]

    result = y.reshape(*lead, N)
    if N == 1:
        result = result.reshape(*lead)   # squeeze(-1), matching the PyTorch module
    return result


class DenseOnlyPallas:
    """Pallas port of DenseOnly(d_model, d_out): a single linear layer, no activation."""

    def __init__(self, d_model: int, d_out: int, *, key=None, dtype=jnp.float32):
        self.d_model = d_model
        self.d_out = d_out
        if key is None:
            key = jax.random.PRNGKey(0)
        kw, kb = jax.random.split(key)
        bound = 1.0 / math.sqrt(d_model)
        # Same init family as torch nn.Linear: U(-1/sqrt(fan_in), 1/sqrt(fan_in)).
        self.weight = jax.random.uniform(kw, (d_out, d_model), dtype, -bound, bound)
        self.bias = jax.random.uniform(kb, (d_out,), dtype, -bound, bound)

    def __call__(self, x):
        return dense_only_forward(x, self.weight, self.bias)


def _reference(x, weight, bias, d_out):
    """Pure-JAX reference replicating the PyTorch forward."""
    y = jnp.einsum("...k,nk->...n", x, weight) + bias
    if d_out == 1:
        y = y[..., 0]
    return y


if __name__ == "__main__":
    B, S, d_model = 2, 8, 32

    key = jax.random.PRNGKey(0)
    kx, k1, k2, k3 = jax.random.split(key, 4)
    x = jax.random.normal(kx, (B, S, d_model), dtype=jnp.float32)

    # d_out == 1: squeeze(-1) branch, resident transposed-output kernel.
    mod1 = DenseOnlyPallas(d_model, 1, key=k1)
    out1 = jax.block_until_ready(mod1(x))
    ref1 = _reference(x, mod1.weight, mod1.bias, 1)
    assert out1.shape == (B, S), f"bad shape {out1.shape}"
    assert jnp.allclose(out1, ref1, atol=1e-4, rtol=1e-4), "mismatch (d_out=1)"

    # d_out == 4: no squeeze, still the transposed resident kernel.
    mod4 = DenseOnlyPallas(d_model, 4, key=k2)
    out4 = jax.block_until_ready(mod4(x))
    ref4 = _reference(x, mod4.weight, mod4.bias, 4)
    assert out4.shape == (B, S, 4), f"bad shape {out4.shape}"
    assert jnp.allclose(out4, ref4, atol=1e-4, rtol=1e-4), "mismatch (d_out=4)"

    # wide d_out: normal-orientation resident kernel.
    mod128 = DenseOnlyPallas(d_model, 128, key=k3)
    out128 = jax.block_until_ready(mod128(x))
    ref128 = _reference(x, mod128.weight, mod128.bias, 128)
    assert out128.shape == (B, S, 128), f"bad shape {out128.shape}"
    assert jnp.allclose(out128, ref128, atol=1e-4, rtol=1e-4), "mismatch (d_out=128)"

    # Exercise the tiled fallback paths on small shapes as well.
    yt = dense_only_forward(x, mod4.weight, mod4.bias, force_tiled=True)  # k_grid == 1
    assert jnp.allclose(jax.block_until_ready(yt), ref4, atol=1e-4, rtol=1e-4), \
        "mismatch (tiled, k_grid=1)"

    kx2, _ = jax.random.split(kx)
    xk = jax.random.normal(kx2, (B, S, 640), dtype=jnp.float32)
    modk = DenseOnlyPallas(640, 4, key=k2)
    refk = _reference(xk, modk.weight, modk.bias, 4)
    yk = dense_only_forward(xk, modk.weight, modk.bias, force_tiled=True)  # k_grid > 1
    assert jnp.allclose(jax.block_until_ready(yk), refk, atol=1e-2, rtol=1e-3), \
        "mismatch (tiled, k_grid>1)"

    print("KERNEL_OK")
</pallas_src>

<mosaic_0001>
module attributes {stable_mosaic.version = 11 : i64} {
  func.func @_resident_kernel_t(%arg0: i32, %arg1: memref<128x32xf32, #tpu.memory_space<vmem>>, %arg2: memref<1x32xf32, #tpu.memory_space<vmem>>, %arg3: memref<1x1xf32, #tpu.memory_space<vmem>>, %arg4: memref<1x128xf32, #tpu.memory_space<vmem>>) attributes {dimension_semantics = [#tpu.dimension_semantics<parallel>], iteration_bounds = array<i64: 1>, scalar_prefetch = 0 : i64, scratch_operands = 0 : i64, tpu.core_type = #tpu.core_type<tc>, window_params = [{transform_indices = @transform_0, window_bounds = array<i64: 128, 32>}, {pipeline_mode = #tpu.pipeline_mode<synchronous>, transform_indices = @transform_1, window_bounds = array<i64: 1, 32>}, {pipeline_mode = #tpu.pipeline_mode<synchronous>, transform_indices = @transform_2, window_bounds = array<i64: 1, 1>}, {transform_indices = @transform_3, window_bounds = array<i64: 1, 128>}]} {
    %c0 = arith.constant 0 : index
    %c0_0 = arith.constant 0 : index
    %0 = vector.load %arg2[%c0, %c0_0] : memref<1x32xf32, #tpu.memory_space<vmem>>, vector<1x32xf32>
    %c0_1 = arith.constant 0 : index
    %c0_2 = arith.constant 0 : index
    %1 = vector.load %arg1[%c0_1, %c0_2] : memref<128x32xf32, #tpu.memory_space<vmem>>, vector<128x32xf32>
    %cst = arith.constant dense<0.000000e+00> : vector<1x128xf32>
    %2 = tpu.matmul %0, %1, %cst {dimension_numbers = #tpu.dot_dimension_numbers<[1], [1], [0], [0], [0, 0, 1, 0], [], []>} : vector<1x32xf32>, vector<128x32xf32>, vector<1x128xf32> -> vector<1x128xf32>
    %c0_3 = arith.constant 0 : index
    %c0_4 = arith.constant 0 : index
    %3 = vector.load %arg3[%c0_3, %c0_4] : memref<1x1xf32, #tpu.memory_space<vmem>>, vector<1x1xf32>
    %4 = vector.broadcast %3 : vector<1x1xf32> to vector<1x128xf32>
    %5 = arith.addf %2, %4 : vector<1x128xf32>
    %c0_5 = arith.constant 0 : index
    %c0_6 = arith.constant 0 : index
    %6 = vector.load %arg4[%c0_5, %c0_6] : memref<1x128xf32, #tpu.memory_space<vmem>>, vector<1x128xf32>
    tpu.vector_store %arg4[%c0_5, %c0_6], %5 {strides = array<i32>} : memref<1x128xf32, #tpu.memory_space<vmem>>, vector<1x128xf32>,
    return
  }
  func.func @transform_0(%arg0: i32) -> (i32, i32) {
    %c0_i32 = arith.constant 0 : i32
    %c0_i32_0 = arith.constant 0 : i32
    return %arg0, %c0_i32 : i32, i32
  }
  func.func @transform_1(%arg0: i32) -> (i32, i32) {
    %c0_i32 = arith.constant 0 : i32
    %c0_i32_0 = arith.constant 0 : i32
    %c0_i32_1 = arith.constant 0 : i32
    return %c0_i32, %c0_i32_0 : i32, i32
  }
  func.func @transform_2(%arg0: i32) -> (i32, i32) {
    %c0_i32 = arith.constant 0 : i32
    %c0_i32_0 = arith.constant 0 : i32
    %c0_i32_1 = arith.constant 0 : i32
    return %c0_i32, %c0_i32_0 : i32, i32
  }
  func.func @transform_3(%arg0: i32) -> (i32, i32) {
    %c0_i32 = arith.constant 0 : i32
    %c0_i32_0 = arith.constant 0 : i32
    return %c0_i32, %arg0 : i32, i32
  }
}

</mosaic_0001>

<bundles_post_ra>
// kernel: tpu_custom_call.1
= control target key start
LH: loop header
LB: loop body
LE: loop exit
PB: predicated region body
PF: predicated region fallthrough
CT: control target
= control target key end

     0   :  { %s426_s0 = inlined_call_operand.vmem [shape: f32[128,32], index: 0, kind: input, shape index: {}]   ;;  %s427_s1 = inlined_call_operand.vmem [shape: f32[1,32], index: 1, kind: input, shape index: {}]   ;;  %s428_s2 = inlined_call_operand.<no memory space> [shape: f32[1,1], index: 2, kind: input, shape index: {}]   ;;  %s429_s3 = inlined_call_operand.hbm [shape: f32[1,128], index: 3, kind: output, shape index: {}]  }
   0x1   :  { %v8_v0 = vstv %s428_s2 }
   0x2   :  { %9 = vst [vmem:[#allocation2] sm:$0x1] %v8_v0 }
   0x3   :  { %v18_v1 = vld [vmem:[%s426_s0] sm:$0xff]  ;;  %v19_v2 = vld [vmem:[%s426_s0 + $0x8] sm:$0xff]  ;;  %vm44_vm0 = vcmask 261120   ;;  %v312_v3 = vmov 0.0|0.0   ;;  %vm313_vm2 = vmmov 0   ;;  %v314_v6 = vmov 0.0  }
   0x4   :  { %250 = vmatprep.subr.bf16.mxu0 %v312_v3  ;;  %v251_v4 = vpack.c.bf16 %v19_v2, %v18_v1  ;;  %vm348_vm1 = vmpackc.low %vm44_vm0, %vm44_vm0  ;;  %247 = vmatprep.mubr.msk.f32.mxu0 %vm313_vm2, %v314_v6  ;;  %v315_v7 = vmov 0   ;;  %v20_v8 = vld [vmem:[%s426_s0 + $0x10] sm:$0xff]  ;;  %v21_v9 = vld [vmem:[%s426_s0 + $0x18] sm:$0xff] }
   0x5   :  { %287 = vset.pattern.permute.xlu0 %v315_v7 }
   0x6   :  { %253 = vmatpush3.bf16.xpose.msk.msra.mxu0 %vm348_vm1, %v251_v4 }
   0x7   :  { %254 = vmatprep.subr.bf16.mxu0 %v312_v3 }
   0x9   :  { %v34_v10 = vld [vmem:[#allocation2] sm:$0x1] }
   0xa   :  { %10 = vsyncpa [#allocation4], 0  ;;  %v255_v11 = vpack.c.bf16 %v21_v9, %v20_v8  ;;  %37 = vperm.xlu0 %287, %v34_v10   ;;  %v22_v12 = vld [vmem:[%s426_s0 + $0x20] sm:$0xff]  ;;  %v23_v13 = vld [vmem:[%s426_s0 + $0x28] sm:$0xff]  ;;  %v40_v31 = vlaneseq  ;;  %s316_s19 = smov [#allocation3]  }
   0xb   :  { %v259_v14 = vpack.c.bf16 %v23_v13, %v22_v12  ;;  %v24_v15 = vld [vmem:[%s426_s0 + $0x30] sm:$0xff]  ;;  %v25_v16 = vld [vmem:[%s426_s0 + $0x38] sm:$0xff]  ;;  %v26_v18 = vld [vmem:[%s426_s0 + $0x40] sm:$0xff]  ;;  %s173_s20 = sshll.u32 %s316_s19, 4  ;;  %s174_s20 = int_to_ptr.vmem [resolvable:$true] %s173_s20 }
   0xc   :  { %v263_v17 = vpack.c.bf16 %v25_v16, %v24_v15  ;;  %v27_v19 = vld [vmem:[%s426_s0 + $0x48] sm:$0xff]  ;;  %v28_v21 = vld [vmem:[%s426_s0 + $0x50] sm:$0xff]  ;;  %v29_v22 = vld [vmem:[%s426_s0 + $0x58] sm:$0xff]  ;;  %v41_v32 = vshrl.u32 %v40_v31, 7  ;;  %s292_s21 = scalar_lea.vmem %s174_s20, 32  ;;  %p293_p1 = scmp.lt.s32.totalorder %s174_s20, %s174_s20 }
   0xd   :  { %v267_v20 = vpack.c.bf16 %v27_v19, %v26_v18  ;;  %v271_v23 = vpack.c.bf16 %v29_v22, %v28_v21  ;;  %v30_v24 = vld [vmem:[%s426_s0 + $0x60] sm:$0xff]  ;;  %v31_v25 = vld [vmem:[%s426_s0 + $0x68] sm:$0xff]  ;;  %v32_v27 = vld [vmem:[%s426_s0 + $0x70] sm:$0xff] }
   0xe   :  { %257 = vmatpush3.bf16.xpose.msk.msra.mxu0 %vm348_vm1, %v255_v11  ;;  %v275_v26 = vpack.c.bf16 %v31_v25, %v30_v24  ;;  %v33_v28 = vld [vmem:[%s426_s0 + $0x78] sm:$0xff]  ;;  %v17_v30 = vld [vmem:[%s427_s1] sm:$0x1]  ;;  %v42_v33 = vsub.s32 0, %v41_v32  ;;  %s288_s0 = scalar_lea.vmem %s174_s20, 16 }
   0xf   :  { %258 = vmatprep.subr.bf16.mxu0 %v312_v3  ;;  %v279_v29 = vpack.c.bf16 %v33_v28, %v32_v27  ;;  %p289_p0 = scmp.ne.s32.totalorder %s174_s20, %s288_s0  ;;  %p294_p2 = scmp.lt.s32.totalorder %s292_s21, %s288_s0 }
  0x11   :  { %p295_p3 = por %p294_p2, %p293_p1 }
  0x13   :  { %p296_p4 = pnand %p295_p3, %p289_p0 }
  0x16   :  { %261 = vmatpush3.bf16.xpose.msk.msra.mxu0 %vm348_vm1, %v259_v14 }
  0x17   :  { %262 = vmatprep.subr.bf16.mxu0 %v312_v3 }
  0x1e   :  { %265 = vmatpush3.bf16.xpose.msk.msra.mxu0 %vm348_vm1, %v263_v17 }
  0x1f   :  { %266 = vmatprep.subr.bf16.mxu0 %v312_v3 }
  0x26   :  { %269 = vmatpush3.bf16.xpose.msk.msra.mxu0 %vm348_vm1, %v267_v20 }
  0x27   :  { %270 = vmatprep.subr.bf16.mxu0 %v312_v3 }
  0x2e   :  { %273 = vmatpush3.bf16.xpose.msk.msra.mxu0 %vm348_vm1, %v271_v23 }
  0x2f   :  { %274 = vmatprep.subr.bf16.mxu0 %v312_v3 }
  0x36   :  { %277 = vmatpush3.bf16.xpose.msk.msra.mxu0 %vm348_vm1, %v275_v26 }
  0x37   :  { %278 = vmatprep.subr.bf16.mxu0 %v312_v3 }
  0x3e   :  { %281 = vmatpush3.bf16.xpose.msk.msra.mxu0 %vm348_vm1, %v279_v29 }
  0x45   :  { %248 = vmatmul.mubr.msk.f32.vlgmr.msra.gmra.mrb[0].mxu0 %vm44_vm0, %v17_v30 }
  0x89   :  { %v38_v34 = vpop.permute.xlu0 %37 }
  0x8a   :  { %v43_v35 = vrot.slane %v38_v34, %v42_v33 }
 0x118   :  { %v162_v36 = vpop.f32.mrb[0].mxu0 }
 0x119   :  { %v163_v37 = vadd.f32 %v162_v36, %v43_v35  ;;  %v249_v38 = vpop.f32.mrb[1].mxu0 }
 0x11b   :  { %166 = vst [vmem:[#allocation3] sm:$0x1] %v163_v37 }
 0x11c   :  { %299 = shalt.err (!%p296_p4)
}
 0x11d   :  { %s300_s23 = scalar_lea.hbm %s429_s3, 16 }
 0x11e   :  { %p301_p5 = scmp.ne.s32.totalorder %s429_s3, %s300_s23  ;;  %p304_p6 = scmp.lt.u32.totalorder %s300_s23, %s429_s3 }
 0x120   :  { %p306_p7 = pnand %p304_p6, %p301_p5 }
 0x122   :  { %309 = shalt.err (!%p306_p7)
}
 0x123   :  { %176 = dma.vmem_to_hbm [thread:$0]  %s174_s20, 16, %s429_s3, [#allocation4]  }
 0x124   :  { %310 = dma.done.wait [#allocation4], 16  }
 0x125   :  { %311 = vsyncadd [#allocation4], 4294967280 }
 0x126   :  { %180 = vsyncpa [#allocation4], 1 }

</bundles_post_ra>
